<compile_context>
chip_gen: v5e
topology: v5e:2x2
jax: 0.10.0
libtpu: 0.0.40
codegen_flags: <defaults>
</compile_context>

<pallas_src>
import jax
import jax.numpy as jnp
from jax import lax
from jax.experimental import pallas as pl
from jax.experimental.pallas import tpu as pltpu

ALPHA = 0.25
GAMMA = 2            # fixed in the module; gamma==2 so |y-p|^gamma == (y-p)^2
SMOOTH = 1.0         # SoftDiceLoss smooth=1, p_exp=1 (labels {0,1} -> y**p == y)

NCORES = 2           # leading 'parallel' grid axis
TILE_MAX = 4096      # rows of 128 lanes per DMA block (f32: 2 MiB/input, x2 bufs x2 inputs = 8 MiB)
SUB = 256            # rows per in-kernel sub-slab (keeps the elementwise chain register-resident)
PAD_LOGIT = -1e4     # sigmoid -> 0 exactly, all log terms finite => filler contributes exactly 0


def _make_kernel(rows, tile, steps, sub):
    """rows/tile/steps/sub are Python ints closed over; out_ref is (3, 8, 128) per core."""
    nsub = tile // sub

    def kernel(x_ref, y_ref, out_ref):
        i = pl.program_id(1)

        @pl.when(i == 0)
        def _init():
            out_ref[...] = jnp.zeros_like(out_ref)

        t = pl.program_id(0) * steps + i      # logical tile index (DMA index is clamped in in_map)
        rem = rows - t * tile                 # number of valid rows in this logical tile

        def fold(v):
            # (sub, 128) -> (8, 128): fold whole vregs with plain VPU adds (layout-free reshape).
            return v.reshape(sub // 8, 8, 128).sum(axis=0)

        def elementwise(x, y):
            # sigmoid via EUP tanh (exact, no divide); log-sigmoid via
            #   log p      = min(x, 0) + log(max(p, 1-p))        (argument of log is >= 0.5)
            #   log(1 - p) = log p - x
            # Everything stays finite even for saturated |x| and the PAD_LOGIT filler.
            p = 0.5 * jnp.tanh(0.5 * x) + 0.5
            q = jnp.maximum(p, 1.0 - p)
            log_p = jnp.minimum(x, 0.0) + jnp.log(q)
            log_1mp = log_p - x
            # Binary labels -> select the focal weight instead of two multiplies + add.
            w = jnp.where(y > 0.5, ALPHA * log_p, (1.0 - ALPHA) * log_1mp)
            d = y - p
            return p * y, p + y, (d * d) * w          # focal sign is applied in the epilogue

        def accumulate(masked):
            def body(s, acc):
                acc_py, acc_den, acc_fl = acc
                off = pl.multiple_of(s * sub, sub)
                x = x_ref[pl.ds(off, sub), :].astype(jnp.float32)
                y = y_ref[pl.ds(off, sub), :].astype(jnp.float32)
                if masked:
                    # Replace out-of-range rows BEFORE any math so stale/garbage VMEM (possibly
                    # NaN bit patterns in the partial last block) never reaches the arithmetic.
                    rid = lax.broadcasted_iota(jnp.int32, (sub, 128), 0)
                    ok = rid < (rem - off)
                    x = jnp.where(ok, x, PAD_LOGIT)
                    y = jnp.where(ok, y, 0.0)
                py, den, fl = elementwise(x, y)
                return (acc_py + fold(py), acc_den + fold(den), acc_fl + fold(fl))

            z = jnp.zeros((8, 128), jnp.float32)
            acc = lax.fori_loop(0, nsub, body, (z, z, z))
            out_ref[0] += acc[0]
            out_ref[1] += acc[1]
            out_ref[2] += acc[2]

        @pl.when(rem >= tile)          # steady state: every row valid, mask-free
        def _full():
            accumulate(masked=False)

        @pl.when(rem < tile)           # ragged / overshoot tiles only: masked by global row index
        def _ragged():
            accumulate(masked=True)

    return kernel


def _sublane(dtype):
    # Sublane tiling granularity: 8 rows for 32-bit, 16 for 16-bit, 32 for 8-bit / bool dtypes.
    return {4: 8, 2: 16, 1: 32}.get(jnp.dtype(dtype).itemsize, 8)


def soft_dice_focal_loss(logits, labels):
    """logits, labels: same shape (e.g. NCHW); labels binary {0,1}. Returns scalar f32 loss.
    Inputs stay in their original HBM dtype (bf16 logits / bool-int8 labels are fine); the kernel
    upcasts to f32 after the VMEM load."""
    assert logits.shape == labels.shape
    n_valid = int(logits.size)

    g = max(_sublane(logits.dtype), _sublane(labels.dtype))
    x = logits.reshape(-1)
    y = labels.reshape(-1)

    rows = pl.cdiv(n_valid, 128)
    if n_valid % 128 != 0 or rows < g:
        # Only unavoidable padding: a lane-ragged tail (<128 elems) or fewer rows than one sublane
        # tile. PAD_LOGIT / 0 filler contributes exactly zero to every partial sum, so no mask is
        # needed for it. Large well-shaped tensors (size % 128 == 0) take the zero-copy path.
        rows = max(rows, g)
        x = jnp.pad(x, (0, rows * 128 - n_valid), constant_values=PAD_LOGIT)
        y = jnp.pad(y, (0, rows * 128 - n_valid), constant_values=0)
    x2 = x.reshape(rows, 128)
    y2 = y.reshape(rows, 128)

    # Row-block: >= one sublane tile, <= TILE_MAX, a multiple of g, never larger than the array,
    # and a multiple of SUB once large enough so the in-kernel sub-slab loop divides it exactly.
    tile = min(TILE_MAX, max(g, (rows // (NCORES * g)) * g))
    if tile >= SUB:
        tile = (tile // SUB) * SUB
    sub = min(SUB, tile)
    total_tiles = pl.cdiv(rows, tile)
    steps = pl.cdiv(total_tiles, NCORES)

    def in_map(c, i):
        # Clamp so overshoot tiles (total_tiles not a multiple of NCORES) re-read the last valid
        # block instead of DMA-ing past the array; the kernel masks their contribution to zero.
        return (jnp.minimum(c * steps + i, total_tiles - 1), 0)

    partials = pl.pallas_call(
        _make_kernel(rows=rows, tile=tile, steps=steps, sub=sub),
        out_shape=jax.ShapeDtypeStruct((NCORES * 3, 8, 128), jnp.float32),
        grid_spec=pltpu.PrefetchScalarGridSpec(
            num_scalar_prefetch=0,
            grid=(NCORES, steps),
            in_specs=[
                pl.BlockSpec((tile, 128), in_map),
                pl.BlockSpec((tile, 128), in_map),
            ],
            out_specs=pl.BlockSpec((3, 8, 128), lambda c, i: (c, 0, 0)),
        ),
        compiler_params=pltpu.CompilerParams(
            dimension_semantics=("parallel", "arbitrary"),
        ),
    )(x2, y2)

    # Tiny epilogue: combine per-core / per-lane partials (24 KiB) into the scalar loss.
    sums = partials.reshape(NCORES, 3, 8, 128).sum(axis=(0, 2, 3))
    dice = 1.0 - (2.0 * sums[0] + SMOOTH) / (sums[1] + SMOOTH)
    focal = -sums[2] / jnp.float32(n_valid)        # reduction='mean'; sign folded out of the kernel
    return dice + focal


def _reference(logits, labels):
    x = logits.reshape(-1).astype(jnp.float32)
    y = labels.reshape(-1).astype(jnp.float32)
    p = jax.nn.sigmoid(x)
    dice = 1.0 - (2.0 * jnp.sum(p * y) + SMOOTH) / (jnp.sum(p + y) + SMOOTH)
    log_p = -jax.nn.softplus(-x)
    log_1mp = -jax.nn.softplus(x)
    fl = -jnp.abs(y - p) ** GAMMA * (ALPHA * y * log_p + (1.0 - ALPHA) * (1.0 - y) * log_1mp)
    return dice + jnp.mean(fl)


if __name__ == "__main__":
    key = jax.random.PRNGKey(0)
    ks = jax.random.split(key, 8)

    def check(logits, labels, tol):
        out = jax.block_until_ready(soft_dice_focal_loss(logits, labels))
        ref = jax.block_until_ready(_reference(logits, labels))
        assert jnp.allclose(out, ref, rtol=tol, atol=tol), (logits.shape, out, ref)

    # NCHW, element count a multiple of 128 -> zero-copy (no pad) path.
    logits1 = jax.random.normal(ks[0], (2, 4, 16, 16), dtype=jnp.float32) * 2.0
    labels1 = jax.random.bernoulli(ks[1], 0.3, (2, 4, 16, 16)).astype(jnp.float32)
    check(logits1, labels1, 1e-5)

    # Ragged element count -> minimal lane pad + fully masked overshoot tile.
    logits2 = jax.random.normal(ks[2], (2, 3, 7, 11), dtype=jnp.float32) * 2.0
    labels2 = jax.random.bernoulli(ks[3], 0.3, (2, 3, 7, 11)).astype(jnp.float32)
    check(logits2, labels2, 1e-5)

    # Row count not a multiple of the tile -> in-kernel masked partial last block, no pad.
    logits3 = jax.random.normal(ks[4], (2, 4, 48, 100), dtype=jnp.float32) * 2.0
    labels3 = jax.random.bernoulli(ks[5], 0.3, (2, 4, 48, 100)).astype(jnp.float32)
    check(logits3, labels3, 1e-5)

    # bf16 logits kept compact in HBM (upcast in VMEM); size large enough to use the sub-slab loop.
    logits4 = (jax.random.normal(ks[6], (4, 8, 128, 128), dtype=jnp.float32) * 2.0).astype(jnp.bfloat16)
    labels4 = jax.random.bernoulli(ks[7], 0.3, (4, 8, 128, 128)).astype(jnp.float32)
    check(logits4, labels4, 1e-4)

    print("KERNEL_OK")
</pallas_src>

<mosaic_0001>
module attributes {stable_mosaic.version = 11 : i64} {
  func.func @kernel(%arg0: i32, %arg1: i32, %arg2: memref<8x128xf32, #tpu.memory_space<vmem>>, %arg3: memref<8x128xf32, #tpu.memory_space<vmem>>, %arg4: memref<3x8x128xf32, #tpu.memory_space<vmem>>) attributes {dimension_semantics = [#tpu.dimension_semantics<parallel>, #tpu.dimension_semantics<arbitrary>], iteration_bounds = array<i64: 2, 1>, scalar_prefetch = 0 : i64, scratch_operands = 0 : i64, tpu.core_type = #tpu.core_type<tc>, window_params = [{transform_indices = @transform_0, window_bounds = array<i64: 8, 128>}, {transform_indices = @transform_1, window_bounds = array<i64: 8, 128>}, {transform_indices = @transform_2, window_bounds = array<i64: 3, 8, 128>}]} {
    %c0_i32 = arith.constant 0 : i32
    %0 = arith.cmpi eq, %arg1, %c0_i32 : i32
    %1 = arith.extui %0 : i1 to i32
    %c0_i32_0 = arith.constant 0 : i32
    %2 = arith.cmpi ne, %1, %c0_i32_0 : i32
    scf.if %2 {
      %cst = arith.constant 0.000000e+00 : f32
      %13 = vector.broadcast %cst : f32 to vector<3x8x128xf32>
      %c0 = arith.constant 0 : index
      %c0_5 = arith.constant 0 : index
      %c0_6 = arith.constant 0 : index
      %14 = vector.load %arg4[%c0, %c0_5, %c0_6] : memref<3x8x128xf32, #tpu.memory_space<vmem>>, vector<3x8x128xf32>
      tpu.vector_store %arg4[%c0, %c0_5, %c0_6], %13 {strides = array<i32>} : memref<3x8x128xf32, #tpu.memory_space<vmem>>, vector<3x8x128xf32>,
    } else {
    }
    %c1_i32 = arith.constant 1 : i32
    %3 = arith.muli %arg0, %c1_i32 : i32
    %4 = arith.addi %3, %arg1 : i32
    %c8_i32 = arith.constant 8 : i32
    %5 = arith.muli %4, %c8_i32 : i32
    %c16_i32 = arith.constant 16 : i32
    %6 = arith.subi %c16_i32, %5 : i32
    %c8_i32_1 = arith.constant 8 : i32
    %7 = arith.cmpi sge, %6, %c8_i32_1 : i32
    %8 = arith.extui %7 : i1 to i32
    %c0_i32_2 = arith.constant 0 : i32
    %9 = arith.cmpi ne, %8, %c0_i32_2 : i32
    scf.if %9 {
      %cst = arith.constant 0.000000e+00 : f32
      %13 = vector.broadcast %cst : f32 to vector<8x128xf32>
      %c0_i32_5 = arith.constant 0 : i32
      %c8_i32_6 = arith.constant 8 : i32
      %14 = arith.muli %c0_i32_5, %c8_i32_6 : i32
      %15 = tpu.assume_multiple %14, 8 : i32
      %16 = arith.index_cast %15 : i32 to index
      %c0 = arith.constant 0 : index
      %17 = vector.load %arg2[%16, %c0] : memref<8x128xf32, #tpu.memory_space<vmem>>, vector<8x128xf32>
      %18 = arith.index_cast %15 : i32 to index
      %c0_7 = arith.constant 0 : index
      %19 = vector.load %arg3[%18, %c0_7] : memref<8x128xf32, #tpu.memory_space<vmem>>, vector<8x128xf32>
      %cst_8 = arith.constant 5.000000e-01 : f32
      %20 = vector.broadcast %cst_8 : f32 to vector<8x128xf32>
      %21 = arith.mulf %20, %17 : vector<8x128xf32>
      %22 = math.tanh %21 : vector<8x128xf32>
      %cst_9 = arith.constant 5.000000e-01 : f32
      %23 = vector.broadcast %cst_9 : f32 to vector<8x128xf32>
      %24 = arith.mulf %23, %22 : vector<8x128xf32>
      %cst_10 = arith.constant 5.000000e-01 : f32
      %25 = vector.broadcast %cst_10 : f32 to vector<8x128xf32>
      %26 = arith.addf %24, %25 : vector<8x128xf32>
      %cst_11 = arith.constant 1.000000e+00 : f32
      %27 = vector.broadcast %cst_11 : f32 to vector<8x128xf32>
      %28 = arith.subf %27, %26 : vector<8x128xf32>
      %29 = arith.maximumf %26, %28 : vector<8x128xf32>
      %cst_12 = arith.constant 0.000000e+00 : f32
      %30 = vector.broadcast %cst_12 : f32 to vector<8x128xf32>
      %31 = arith.minimumf %17, %30 : vector<8x128xf32>
      %32 = math.log %29 : vector<8x128xf32>
      %33 = arith.addf %31, %32 : vector<8x128xf32>
      %34 = arith.subf %33, %17 : vector<8x128xf32>
      %cst_13 = arith.constant 5.000000e-01 : f32
      %35 = vector.broadcast %cst_13 : f32 to vector<8x128xf32>
      %36 = arith.cmpf ogt, %19, %35 : vector<8x128xf32>
      %cst_14 = arith.constant 2.500000e-01 : f32
      %37 = vector.broadcast %cst_14 : f32 to vector<8x128xf32>
      %38 = arith.mulf %37, %33 : vector<8x128xf32>
      %cst_15 = arith.constant 7.500000e-01 : f32
      %39 = vector.broadcast %cst_15 : f32 to vector<8x128xf32>
      %40 = arith.mulf %39, %34 : vector<8x128xf32>
      %41 = arith.select %36, %38, %40 : vector<8x128xi1>, vector<8x128xf32>
      %42 = arith.subf %19, %26 : vector<8x128xf32>
      %43 = arith.mulf %26, %19 : vector<8x128xf32>
      %44 = arith.addf %26, %19 : vector<8x128xf32>
      %45 = arith.mulf %42, %42 : vector<8x128xf32>
      %46 = arith.mulf %45, %41 : vector<8x128xf32>
      %47 = vector.shape_cast %43 : vector<8x128xf32> to vector<1x8x128xf32>
      %cst_16 = arith.constant dense<0.000000e+00> : vector<8x128xf32>
      %48 = vector.multi_reduction <add>, %47, %cst_16 [0] : vector<1x8x128xf32> to vector<8x128xf32>
      %49 = arith.addf %13, %48 : vector<8x128xf32>
      %50 = vector.shape_cast %44 : vector<8x128xf32> to vector<1x8x128xf32>
      %cst_17 = arith.constant dense<0.000000e+00> : vector<8x128xf32>
      %51 = vector.multi_reduction <add>, %50, %cst_17 [0] : vector<1x8x128xf32> to vector<8x128xf32>
      %52 = arith.addf %13, %51 : vector<8x128xf32>
      %53 = vector.shape_cast %46 : vector<8x128xf32> to vector<1x8x128xf32>
      %cst_18 = arith.constant dense<0.000000e+00> : vector<8x128xf32>
      %54 = vector.multi_reduction <add>, %53, %cst_18 [0] : vector<1x8x128xf32> to vector<8x128xf32>
      %55 = arith.addf %13, %54 : vector<8x128xf32>
      %c1_i32_19 = arith.constant 1 : i32
      %c0_20 = arith.constant 0 : index
      %c0_21 = arith.constant 0 : index
      %c0_22 = arith.constant 0 : index
      %56 = vector.load %arg4[%c0_20, %c0_21, %c0_22] : memref<3x8x128xf32, #tpu.memory_space<vmem>>, vector<1x8x128xf32>
      %57 = vector.shape_cast %56 : vector<1x8x128xf32> to vector<8x128xf32>
      %58 = arith.addf %57, %49 : vector<8x128xf32>
      %c0_23 = arith.constant 0 : index
      %c0_24 = arith.constant 0 : index
      %c0_25 = arith.constant 0 : index
      %59 = vector.load %arg4[%c0_23, %c0_24, %c0_25] : memref<3x8x128xf32, #tpu.memory_space<vmem>>, vector<1x8x128xf32>
      %60 = vector.shape_cast %59 : vector<1x8x128xf32> to vector<8x128xf32>
      %61 = vector.shape_cast %58 : vector<8x128xf32> to vector<1x8x128xf32>
      tpu.vector_store %arg4[%c0_23, %c0_24, %c0_25], %61 {strides = array<i32>} : memref<3x8x128xf32, #tpu.memory_space<vmem>>, vector<1x8x128xf32>,
      %c1 = arith.constant 1 : index
      %c0_26 = arith.constant 0 : index
      %c0_27 = arith.constant 0 : index
      %62 = vector.load %arg4[%c1, %c0_26, %c0_27] : memref<3x8x128xf32, #tpu.memory_space<vmem>>, vector<1x8x128xf32>
      %63 = vector.shape_cast %62 : vector<1x8x128xf32> to vector<8x128xf32>
      %64 = arith.addf %63, %52 : vector<8x128xf32>
      %c1_28 = arith.constant 1 : index
      %c0_29 = arith.constant 0 : index
      %c0_30 = arith.constant 0 : index
      %65 = vector.load %arg4[%c1_28, %c0_29, %c0_30] : memref<3x8x128xf32, #tpu.memory_space<vmem>>, vector<1x8x128xf32>
      %66 = vector.shape_cast %65 : vector<1x8x128xf32> to vector<8x128xf32>
      %67 = vector.shape_cast %64 : vector<8x128xf32> to vector<1x8x128xf32>
      tpu.vector_store %arg4[%c1_28, %c0_29, %c0_30], %67 {strides = array<i32>} : memref<3x8x128xf32, #tpu.memory_space<vmem>>, vector<1x8x128xf32>,
      %c2 = arith.constant 2 : index
      %c0_31 = arith.constant 0 : index
      %c0_32 = arith.constant 0 : index
      %68 = vector.load %arg4[%c2, %c0_31, %c0_32] : memref<3x8x128xf32, #tpu.memory_space<vmem>>, vector<1x8x128xf32>
      %69 = vector.shape_cast %68 : vector<1x8x128xf32> to vector<8x128xf32>
      %70 = arith.addf %69, %55 : vector<8x128xf32>
      %c2_33 = arith.constant 2 : index
      %c0_34 = arith.constant 0 : index
      %c0_35 = arith.constant 0 : index
      %71 = vector.load %arg4[%c2_33, %c0_34, %c0_35] : memref<3x8x128xf32, #tpu.memory_space<vmem>>, vector<1x8x128xf32>
      %72 = vector.shape_cast %71 : vector<1x8x128xf32> to vector<8x128xf32>
      %73 = vector.shape_cast %70 : vector<8x128xf32> to vector<1x8x128xf32>
      tpu.vector_store %arg4[%c2_33, %c0_34, %c0_35], %73 {strides = array<i32>} : memref<3x8x128xf32, #tpu.memory_space<vmem>>, vector<1x8x128xf32>,
    } else {
    }
    %c8_i32_3 = arith.constant 8 : i32
    %10 = arith.cmpi slt, %6, %c8_i32_3 : i32
    %11 = arith.extui %10 : i1 to i32
    %c0_i32_4 = arith.constant 0 : i32
    %12 = arith.cmpi ne, %11, %c0_i32_4 : i32
    scf.if %12 {
      %cst = arith.constant 0.000000e+00 : f32
      %13 = vector.broadcast %cst : f32 to vector<8x128xf32>
      %c0_i32_5 = arith.constant 0 : i32
      %c8_i32_6 = arith.constant 8 : i32
      %14 = arith.muli %c0_i32_5, %c8_i32_6 : i32
      %15 = tpu.assume_multiple %14, 8 : i32
      %16 = arith.index_cast %15 : i32 to index
      %c0 = arith.constant 0 : index
      %17 = vector.load %arg2[%16, %c0] : memref<8x128xf32, #tpu.memory_space<vmem>>, vector<8x128xf32>
      %18 = arith.index_cast %15 : i32 to index
      %c0_7 = arith.constant 0 : index
      %19 = vector.load %arg3[%18, %c0_7] : memref<8x128xf32, #tpu.memory_space<vmem>>, vector<8x128xf32>
      %20 = tpu.iota {dimensions = array<i32: 0>} : vector<8x128xi32>
      %21 = arith.subi %6, %15 : i32
      %22 = vector.broadcast %21 : i32 to vector<8x128xi32>
      %23 = arith.cmpi slt, %20, %22 : vector<8x128xi32>
      %cst_8 = arith.constant -1.000000e+04 : f32
      %24 = vector.broadcast %cst_8 : f32 to vector<8x128xf32>
      %25 = arith.select %23, %17, %24 : vector<8x128xi1>, vector<8x128xf32>
      %cst_9 = arith.constant 0.000000e+00 : f32
      %26 = vector.broadcast %cst_9 : f32 to vector<8x128xf32>
      %27 = arith.select %23, %19, %26 : vector<8x128xi1>, vector<8x128xf32>
      %cst_10 = arith.constant 5.000000e-01 : f32
      %28 = vector.broadcast %cst_10 : f32 to vector<8x128xf32>
      %29 = arith.mulf %28, %25 : vector<8x128xf32>
      %30 = math.tanh %29 : vector<8x128xf32>
      %cst_11 = arith.constant 5.000000e-01 : f32
      %31 = vector.broadcast %cst_11 : f32 to vector<8x128xf32>
      %32 = arith.mulf %31, %30 : vector<8x128xf32>
      %cst_12 = arith.constant 5.000000e-01 : f32
      %33 = vector.broadcast %cst_12 : f32 to vector<8x128xf32>
      %34 = arith.addf %32, %33 : vector<8x128xf32>
      %cst_13 = arith.constant 1.000000e+00 : f32
      %35 = vector.broadcast %cst_13 : f32 to vector<8x128xf32>
      %36 = arith.subf %35, %34 : vector<8x128xf32>
      %37 = arith.maximumf %34, %36 : vector<8x128xf32>
      %cst_14 = arith.constant 0.000000e+00 : f32
      %38 = vector.broadcast %cst_14 : f32 to vector<8x128xf32>
      %39 = arith.minimumf %25, %38 : vector<8x128xf32>
      %40 = math.log %37 : vector<8x128xf32>
      %41 = arith.addf %39, %40 : vector<8x128xf32>
      %42 = arith.subf %41, %25 : vector<8x128xf32>
      %cst_15 = arith.constant 5.000000e-01 : f32
      %43 = vector.broadcast %cst_15 : f32 to vector<8x128xf32>
      %44 = arith.cmpf ogt, %27, %43 : vector<8x128xf32>
      %cst_16 = arith.constant 2.500000e-01 : f32
      %45 = vector.broadcast %cst_16 : f32 to vector<8x128xf32>
      %46 = arith.mulf %45, %41 : vector<8x128xf32>
      %cst_17 = arith.constant 7.500000e-01 : f32
      %47 = vector.broadcast %cst_17 : f32 to vector<8x128xf32>
      %48 = arith.mulf %47, %42 : vector<8x128xf32>
      %49 = arith.select %44, %46, %48 : vector<8x128xi1>, vector<8x128xf32>
      %50 = arith.subf %27, %34 : vector<8x128xf32>
      %51 = arith.mulf %34, %27 : vector<8x128xf32>
      %52 = arith.addf %34, %27 : vector<8x128xf32>
      %53 = arith.mulf %50, %50 : vector<8x128xf32>
      %54 = arith.mulf %53, %49 : vector<8x128xf32>
      %55 = vector.shape_cast %51 : vector<8x128xf32> to vector<1x8x128xf32>
      %cst_18 = arith.constant dense<0.000000e+00> : vector<8x128xf32>
      %56 = vector.multi_reduction <add>, %55, %cst_18 [0] : vector<1x8x128xf32> to vector<8x128xf32>
      %57 = arith.addf %13, %56 : vector<8x128xf32>
      %58 = vector.shape_cast %52 : vector<8x128xf32> to vector<1x8x128xf32>
      %cst_19 = arith.constant dense<0.000000e+00> : vector<8x128xf32>
      %59 = vector.multi_reduction <add>, %58, %cst_19 [0] : vector<1x8x128xf32> to vector<8x128xf32>
      %60 = arith.addf %13, %59 : vector<8x128xf32>
      %61 = vector.shape_cast %54 : vector<8x128xf32> to vector<1x8x128xf32>
      %cst_20 = arith.constant dense<0.000000e+00> : vector<8x128xf32>
      %62 = vector.multi_reduction <add>, %61, %cst_20 [0] : vector<1x8x128xf32> to vector<8x128xf32>
      %63 = arith.addf %13, %62 : vector<8x128xf32>
      %c1_i32_21 = arith.constant 1 : i32
      %c0_22 = arith.constant 0 : index
      %c0_23 = arith.constant 0 : index
      %c0_24 = arith.constant 0 : index
      %64 = vector.load %arg4[%c0_22, %c0_23, %c0_24] : memref<3x8x128xf32, #tpu.memory_space<vmem>>, vector<1x8x128xf32>
      %65 = vector.shape_cast %64 : vector<1x8x128xf32> to vector<8x128xf32>
      %66 = arith.addf %65, %57 : vector<8x128xf32>
      %c0_25 = arith.constant 0 : index
      %c0_26 = arith.constant 0 : index
      %c0_27 = arith.constant 0 : index
      %67 = vector.load %arg4[%c0_25, %c0_26, %c0_27] : memref<3x8x128xf32, #tpu.memory_space<vmem>>, vector<1x8x128xf32>
      %68 = vector.shape_cast %67 : vector<1x8x128xf32> to vector<8x128xf32>
      %69 = vector.shape_cast %66 : vector<8x128xf32> to vector<1x8x128xf32>
      tpu.vector_store %arg4[%c0_25, %c0_26, %c0_27], %69 {strides = array<i32>} : memref<3x8x128xf32, #tpu.memory_space<vmem>>, vector<1x8x128xf32>,
      %c1 = arith.constant 1 : index
      %c0_28 = arith.constant 0 : index
      %c0_29 = arith.constant 0 : index
      %70 = vector.load %arg4[%c1, %c0_28, %c0_29] : memref<3x8x128xf32, #tpu.memory_space<vmem>>, vector<1x8x128xf32>
      %71 = vector.shape_cast %70 : vector<1x8x128xf32> to vector<8x128xf32>
      %72 = arith.addf %71, %60 : vector<8x128xf32>
      %c1_30 = arith.constant 1 : index
      %c0_31 = arith.constant 0 : index
      %c0_32 = arith.constant 0 : index
      %73 = vector.load %arg4[%c1_30, %c0_31, %c0_32] : memref<3x8x128xf32, #tpu.memory_space<vmem>>, vector<1x8x128xf32>
      %74 = vector.shape_cast %73 : vector<1x8x128xf32> to vector<8x128xf32>
      %75 = vector.shape_cast %72 : vector<8x128xf32> to vector<1x8x128xf32>
      tpu.vector_store %arg4[%c1_30, %c0_31, %c0_32], %75 {strides = array<i32>} : memref<3x8x128xf32, #tpu.memory_space<vmem>>, vector<1x8x128xf32>,
      %c2 = arith.constant 2 : index
      %c0_33 = arith.constant 0 : index
      %c0_34 = arith.constant 0 : index
      %76 = vector.load %arg4[%c2, %c0_33, %c0_34] : memref<3x8x128xf32, #tpu.memory_space<vmem>>, vector<1x8x128xf32>
      %77 = vector.shape_cast %76 : vector<1x8x128xf32> to vector<8x128xf32>
      %78 = arith.addf %77, %63 : vector<8x128xf32>
      %c2_35 = arith.constant 2 : index
      %c0_36 = arith.constant 0 : index
      %c0_37 = arith.constant 0 : index
      %79 = vector.load %arg4[%c2_35, %c0_36, %c0_37] : memref<3x8x128xf32, #tpu.memory_space<vmem>>, vector<1x8x128xf32>
      %80 = vector.shape_cast %79 : vector<1x8x128xf32> to vector<8x128xf32>
      %81 = vector.shape_cast %78 : vector<8x128xf32> to vector<1x8x128xf32>
      tpu.vector_store %arg4[%c2_35, %c0_36, %c0_37], %81 {strides = array<i32>} : memref<3x8x128xf32, #tpu.memory_space<vmem>>, vector<1x8x128xf32>,
    } else {
    }
    return
  }
  func.func @transform_0(%arg0: i32, %arg1: i32) -> (i32, i32) {
    %c1_i32 = arith.constant 1 : i32
    %0 = arith.muli %arg0, %c1_i32 : i32
    %1 = arith.addi %0, %arg1 : i32
    %c1_i32_0 = arith.constant 1 : i32
    %2 = arith.minsi %1, %c1_i32_0 : i32
    %c0_i32 = arith.constant 0 : i32
    %c0_i32_1 = arith.constant 0 : i32
    return %2, %c0_i32 : i32, i32
  }
  func.func @transform_1(%arg0: i32, %arg1: i32) -> (i32, i32) {
    %c1_i32 = arith.constant 1 : i32
    %0 = arith.muli %arg0, %c1_i32 : i32
    %1 = arith.addi %0, %arg1 : i32
    %c1_i32_0 = arith.constant 1 : i32
    %2 = arith.minsi %1, %c1_i32_0 : i32
    %c0_i32 = arith.constant 0 : i32
    %c0_i32_1 = arith.constant 0 : i32
    return %2, %c0_i32 : i32, i32
  }
  func.func @transform_2(%arg0: i32, %arg1: i32) -> (i32, i32, i32) {
    %c0_i32 = arith.constant 0 : i32
    %c0_i32_0 = arith.constant 0 : i32
    %c0_i32_1 = arith.constant 0 : i32
    return %arg0, %c0_i32, %c0_i32_0 : i32, i32, i32
  }
}

</mosaic_0001>

<bundles_post_ra>
// kernel: tpu_custom_call.1
= control target key start
LH: loop header
LB: loop body
LE: loop exit
PB: predicated region body
PF: predicated region fallthrough
CT: control target
= control target key end

     0   :  { %s974_s0 = inlined_call_operand.hbm [shape: f32[16,128], index: 0, kind: input, shape index: {}]   ;;  %s975_s1 = inlined_call_operand.hbm [shape: f32[16,128], index: 1, kind: input, shape index: {}]   ;;  %s976_s2 = inlined_call_operand.hbm [shape: f32[6,8,128], index: 2, kind: output, shape index: {}]  }
   0x1   :  { %979 = sst [smem:[#allocation13_spill]] %s974_s0 }
   0x2   :  { %7 = vsyncpa [#allocation3], 0 }
   0x3   :  { %9 = vsyncpa [#allocation3 + $0x1], 0 }
   0x4   :  { %10 = vsyncpa [#allocation6], 0 }
   0x5   :  { %12 = vsyncpa [#allocation6 + $0x1], 0 }
   0x6   :  { %13 = vsyncpa [#allocation4], 0 }
   0x7   :  { %15 = vsyncpa [#allocation4 + $0x1], 0  ;;  %s779_s9 = smov 0   ;;  %s781_s10 = smov 0  }
   0x8   :  { %s783_s11 = smov 0   ;;  %s785_s12 = smov 0  }
   0x9   :  { %s787_s13 = smov 0   ;;  %s789_s14 = smov 0  }
   0xa   :  { %s791_s15 = smov 0   ;;  %s793_s16 = smov 0  }
   0xb   :  { %s795_s17 = smov 0  }
   0xc LB: > { %980 = sst [smem:[#allocation11_spill]] %s755_s16  ;;  %s460_s18 = sadd.s32 4294967295, %s759_s17   ;;  %s759_s17 = sphi %s795_s17, %s21_s17   ;;  %s755_s16 = sphi %s793_s16, %s988_s16   ;;  %s751_s15 = sphi %s791_s15, %s987_s15   ;;  %s747_s14 = sphi %s789_s14, %s994_s14   ;;  %s743_s13 = sphi %s787_s13, %s993_s13   ;;  %s739_s12 = sphi %s785_s12, %s992_s12   ;;  %s735_s11 = sphi %s783_s11, %s991_s11   ;;  %s731_s10 = sphi %s781_s10, %s990_s10   ;;  %s727_s9 = sphi %s779_s9, %s989_s9  }
   0xd   : > { %s461_s19 = sadd.s32 4294967294, %s759_s17   ;;  %s33_s20 = sadd.s32 1, %s755_s16 }
   0xe   : > { %p38_p0 = scmp.lt.s32.totalorder %s755_s16, 1  ;;  %p35_p1 = scmp.ge.s32.totalorder %s33_s20, 2 }
   0xf   : > { %s46_s21 = sadd.s32 1, %s747_s14  ;;  %p53_p2 = scmp.ne.s32.totalorder %s747_s14, %s743_s13 }
  0x10   : > { %s828_s22 = scalar_select %p38_p0, %s755_s16, 1 }
  0x11   : > { %s996_s20 = smov (%p35_p1, %s33_s20), 0  ;;  %p54_p3 = scmp.eq.s32.totalorder %s759_s17, 0 }
  0x12   : > { %981 = sst [smem:[#allocation12_spill]] %s996_s20  ;;  %p41_p4 = scmp.lt.s32.totalorder %s996_s20, 1 }
  0x13   : > { %p59_p5 = scmp.ne.s32.totalorder %s743_s13, %s739_s12  ;;  %p837_p6 = por %p54_p3, %p53_p2 }
  0x14   : > { %p60_p7 = scmp.eq.s32.totalorder %s460_s18, 0  ;;  %s101_s26 = ssub.s32 %s755_s16, %s996_s20 }
  0x15   : > { %s42_s24 = scalar_select %p41_p4, %s996_s20, 1 }
  0x16   : > { %p842_p8 = por %p60_p7, %p59_p5  ;;  %p102_p9 = scmp.eq.s32.totalorder %s101_s26, 0 }
  0x17   : > { %s43_s27 = ssub.s32 %s828_s22, %s42_s24  ;;  %s104_s28 = sadd.s32 1, %s735_s11 }
  0x18   : > { %p44_p10 = scmp.eq.s32.totalorder %s43_s27, 0  ;;  %p114_p11 = scmp.ne.s32.totalorder %s735_s11, %s731_s10 }
  0x19   : > { %s851_s29 = scalar_select %p102_p9, %s735_s11, %s104_s28  }
  0x1a   : > { %s854_s30 = scalar_select %p44_p10, %s747_s14, %s46_s21  }
  0x1b   : > { %p115_p12 = scmp.eq.s32.totalorder %s460_s18, 1  ;;  %p120_p13 = scmp.ne.s32.totalorder %s731_s10, %s727_s9 }
  0x1c   : > { %p121_p0 = scmp.eq.s32.totalorder %s461_s19, 1  ;;  %p463_p2 = scmp.ge.s32.totalorder %s759_s17, 2 }
  0x1d   : > { %p860_p1 = por %p115_p12, %p114_p11  ;;  %p504_p4 = scmp.lt.s32.totalorder %s759_s17, 2 }
  0x1e   : > { %p865_p3 = por %p121_p0, %p120_p13  ;;  %s141_s5 = sand.u32 1, %s747_s14  }
  0x1f   : > { %s465_s6 = sshll.u32 %s828_s22, 3  ;;  %s464_s7 = sshll.u32 %s141_s5, 3 }
  0x20   : > { %s986_s0 = sld [smem:[#allocation13_spill]]  ;;  %s145_s19 = scalar_lea.vmem [#allocation2], %s464_s7 }
  0x21   : > { %s156_s24 = sshll.u32 %s145_s19, 4  ;;  %p494_p5 = pnand %p504_p4, %p837_p6  ;;  %s157_s24 = int_to_ptr.vmem [resolvable:$true] %s156_s24 }
  0x22   : > { %p468_p7 = scmp.ge.s32.totalorder %s759_s17, 1  ;;  %p183_p9 = scmp.lt.s32.totalorder %s759_s17, 3 }
  0x23   : > { %s142_s26 = scalar_lea.sflag [#allocation3], %s141_s5  ;;  %s174_s22 = scalar_lea.hbm %s975_s1, %s465_s6 }
  0x24   : > { %p184_p10 = pnand %p468_p7, %p183_p9  ;;  %s176_s20 = sshll.u32 %s174_s22, 4  ;;  %s177_s20 = int_to_ptr.hbm [resolvable:$true] %s176_s20 }
  0x25   : > { %s167_s16 = scalar_lea.vmem [#allocation5], %s464_s7  ;;  %s164_s12 = scalar_lea.sflag [#allocation6], %s141_s5 }
  0x26   : > { %s152_s18 = scalar_lea.hbm %s986_s0, %s465_s6  ;;  %s178_s8 = sshll.u32 %s167_s16, 4  ;;  %s179_s8 = int_to_ptr.vmem [resolvable:$true] %s178_s8 }
  0x27   : > { %s154_s21 = sshll.u32 %s152_s18, 4  ;;  %187 = sbr.rel (%p184_p10) target bundleno = 164 (0xa4), region = 28  ;;  %s155_s21 = int_to_ptr.hbm [resolvable:$true] %s154_s21 }
  0x28   : > { %496 = dma.hbm_to_vmem [thread:$0]  (!%p494_p5), %s155_s21, 128, %s157_s24, %s142_s26  }
  0x29   : > { %499 = dma.hbm_to_vmem [thread:$0]  (!%p494_p5), %s177_s20, 128, %s179_s8, %s164_s12  }
  0x2a   : > { %s189_s23 = sand.u32 (!%p184_p10), 1, %s743_s13  }
  0x2b   : > { %s469_s18 = sshll.u32 (!%p184_p10), %s189_s23, 3  ;;  %s190_s19 = scalar_lea.sflag (!%p184_p10), [#allocation3], %s189_s23 }
  0x2c   : > { %s883_s0 = scalar_lea.vmem [#allocation2], %s469_s18 }
  0x2d   : > { %714 = dma.done.wait (%p842_p8), %s190_s19, 128  }
  0x2e   : > { %716 = vsyncadd (%p842_p8), %s190_s19, 4294967168  ;;  %s200_s6 = scalar_lea.sflag [#allocation6], %s189_s23  ;;  %s889_s16 = scalar_lea.vmem [#allocation5], %s469_s18 }
  0x2f   : > { %718 = dma.done.wait (%p842_p8), %s200_s6, 128  }
  0x30   : > { %720 = vsyncadd (%p842_p8), %s200_s6, 4294967168  ;;  %s227_s20 = sand.u32 1, %s731_s10   ;;  %s471_s5 = sshll.u32 %s751_s15, 3  ;;  %v761_v0 = vmov 0.0  }
  0x31   : > { %s486_s7 = smul.u32 24, %s227_s20  ;;  %s899_s21 = ssub.s32 16, %s471_s5 }
  0x32   : > { %p472_p6 = scmp.lt.s32.totalorder %s899_s21, 8 }
  0x33   : > { %s901_s24 = scalar_lea.vmem [#allocation7], %s486_s7 }
  0x34   : > { %241 = vst [vmem:[%s901_s24] sm:$0xff] %v761_v0  ;;  %250 = sbr.rel (%p472_p6) target bundleno = 96 (0x60), region = 44 }
  0x35   : > { %242 = vst [vmem:[%s901_s24 + $0x8] sm:$0xff] %v761_v0 }
  0x36   : > { %243 = vst [vmem:[%s901_s24 + $0x10] sm:$0xff] %v761_v0 }
  0x39   : > { %v251_v1 = vld [vmem:[%s883_s0] sm:$0xff]  ;;  %v252_v6 = vld [vmem:[%s889_s16] sm:$0xff] }
  0x3a   : > { %v253_v2 = vmul.f32 0.5, %v251_v1  ;;  %v259_v15 = vmin.f32 %v251_v1, 0.0  ;;  %vm264_vm0 = vcmp.gt.f32.partialorder %v252_v6, 0.5 }
  0x3b   : > { %v279_v7 = vld [vmem:[%s901_s24] sm:$0xff] }
  0x3c   : > { %581 = vtanh.f32 %v253_v2  ;;  %v473_v8 = vld [vmem:[%s901_s24 + $0x8] sm:$0xff] }
  0x3d   : > { %v475_v25 = vld [vmem:[%s901_s24 + $0x10] sm:$0xff] }
  0x42   : > { %v582_v3 = vpop.eup %581 }
  0x43   : > { %v255_v4 = vmul.f32 0.5, %v582_v3 }
  0x45   : > { %v256_v5 = vadd.f32 0.5, %v255_v4 }
  0x47   : > { %v269_v9 = vmul.f32 %v256_v5, %v252_v6  ;;  %v270_v10 = vadd.f32 %v256_v5, %v252_v6  ;;  %v257_v11 = vsub.f32 1.0, %v256_v5  ;;  %v268_v18 = vsub.f32 %v252_v6, %v256_v5 }
  0x49   : > { %v280_v12 = vadd.f32 %v279_v7, %v269_v9  ;;  %v284_v13 = vadd.f32 %v473_v8, %v270_v10  ;;  %v258_v14 = vmax.f32 %v256_v5, %v257_v11  ;;  %v271_v22 = vmul.f32 %v268_v18, %v268_v18 }
  0x4b   : > { %281 = vst [vmem:[%s901_s24] sm:$0xff] %v280_v12  ;;  %583 = vlog2.f32 %v258_v14 }
  0x4c   : > { %474 = vst [vmem:[%s901_s24 + $0x8] sm:$0xff] %v284_v13 }
  0x51   : > { %v584_v16 = vpop.eup %583 }
  0x52   : > { %v261_v17 = vmul.f32 0.6931472, %v584_v16 }
  0x54   : > { %v262_v19 = vadd.f32 %v261_v17, %v259_v15 }
  0x56   : > { %v263_v20 = vsub.f32 %v262_v19, %v251_v1  ;;  %v265_v21 = vmul.f32 0.25, %v262_v19 }
  0x58   : > { %v266_v23 = vmul.f32 0.75, %v263_v20 }
  0x5a   : > { %v267_v24 = vsel %vm264_vm0, %v265_v21, %v266_v23 }
  0x5b   : > { %v272_v26 = vmul.f32 %v271_v22, %v267_v24 }
  0x5d   : > { %v288_v27 = vadd.f32 %v475_v25, %v272_v26 }
  0x5f   : > { %476 = vst [vmem:[%s901_s24 + $0x10] sm:$0xff] %v288_v27 }
  0x60 PF: > { %p477_p8 = scmp.ge.s32.totalorder %s899_s21, 8 }
  0x62   : > { %293 = sbr.rel (%p477_p8) target bundleno = 147 (0x93), region = 48 }
  0x67   : > { %v296_v28 = vlaneseq  ;;  %v299_v29 = vstv %s899_s21  ;;  %v294_v30 = vld [vmem:[%s883_s0] sm:$0xff]  ;;  %v295_v35 = vld [vmem:[%s889_s16] sm:$0xff]  ;;  %v478_v40 = vld [vmem:[%s901_s24 + $0x8] sm:$0xff] }
  0x68   : > { %v329_v39 = vld [vmem:[%s901_s24] sm:$0xff]  ;;  %v480_v57 = vld [vmem:[%s901_s24 + $0x10] sm:$0xff] }
  0x69   : > { %v297_v31 = vshrl.u32 %v296_v28, 7 }
  0x6b   : > { %vm300_vm1 = vcmp.lt.s32.totalorder %v297_v31, %v299_v29 }
  0x6c   : > { %v301_v32 = vsel %vm300_vm1, %v294_v30, -10000.0  ;;  %v302_v38 = vsel %vm300_vm1, %v295_v35, 0.0 }
  0x6d   : > { %v303_v33 = vmul.f32 0.5, %v301_v32  ;;  %v309_v47 = vmin.f32 %v301_v32, 0.0  ;;  %vm314_vm2 = vcmp.gt.f32.partialorder %v302_v38, 0.5 }
  0x6f   : > { %585 = vtanh.f32 %v303_v33 }
  0x75   : > { %v586_v34 = vpop.eup %585 }
  0x76   : > { %v305_v36 = vmul.f32 0.5, %v586_v34 }
  0x78   : > { %v306_v37 = vadd.f32 0.5, %v305_v36 }
  0x7a   : > { %v319_v41 = vmul.f32 %v306_v37, %v302_v38  ;;  %v320_v42 = vadd.f32 %v306_v37, %v302_v38  ;;  %v307_v43 = vsub.f32 1.0, %v306_v37  ;;  %v318_v50 = vsub.f32 %v302_v38, %v306_v37 }
  0x7c   : > { %v330_v44 = vadd.f32 %v329_v39, %v319_v41  ;;  %v334_v45 = vadd.f32 %v478_v40, %v320_v42  ;;  %v308_v46 = vmax.f32 %v306_v37, %v307_v43  ;;  %v321_v54 = vmul.f32 %v318_v50, %v318_v50 }
  0x7e   : > { %331 = vst [vmem:[%s901_s24] sm:$0xff] %v330_v44  ;;  %587 = vlog2.f32 %v308_v46 }
  0x7f   : > { %479 = vst [vmem:[%s901_s24 + $0x8] sm:$0xff] %v334_v45 }
  0x84   : > { %v588_v48 = vpop.eup %587 }
  0x85   : > { %v311_v49 = vmul.f32 0.6931472, %v588_v48 }
  0x87   : > { %v312_v51 = vadd.f32 %v311_v49, %v309_v47 }
  0x89   : > { %v313_v52 = vsub.f32 %v312_v51, %v301_v32  ;;  %v315_v53 = vmul.f32 0.25, %v312_v51 }
  0x8b   : > { %v316_v55 = vmul.f32 0.75, %v313_v52 }
  0x8d   : > { %v317_v56 = vsel %vm314_vm2, %v315_v53, %v316_v55 }
  0x8e   : > { %v322_v58 = vmul.f32 %v321_v54, %v317_v56 }
  0x90   : > { %v338_v59 = vadd.f32 %v480_v57, %v322_v58 }
  0x92   : > { %481 = vst [vmem:[%s901_s24 + $0x10] sm:$0xff] %v338_v59 }
  0x93 PF: > { %s485_s0 = smul.u32 24, %s751_s15  ;;  %s353_s25 = sshll.u32 %s901_s24, 4  ;;  %s354_s25 = int_to_ptr.vmem [resolvable:$true] %s353_s25 }
  0x94   : > { %s341_s8 = scalar_lea.sflag [#allocation4], %s227_s20  ;;  %s669_s15 = scalar_lea.hbm %s976_s2, 48 }
  0x95   : > { %s352_s28 = scalar_lea.hbm %s976_s2, %s485_s0 }
  0x96   : > { %s355_s22 = sshll.u32 %s352_s28, 4  ;;  %s356_s22 = int_to_ptr.hbm [resolvable:$true] %s355_s22 }
  0x97   : > { %s663_s12 = sshra.s32 %s356_s22, 4  ;;  %s664_s12 = int_to_ptr.hbm [resolvable:$true] %s663_s12 }
  0x98   : > { %s665_s23 = scalar_lea.hbm %s664_s12, 24  ;;  %p670_p0 = scmp.lt.s32.totalorder %s664_s12, %s976_s2 }
  0x99   : > { %p666_p11 = scmp.ne.s32.totalorder %s664_s12, %s665_s23  ;;  %p671_p4 = scmp.lt.s32.totalorder %s669_s15, %s665_s23 }
  0x9b   : > { %p667_p12 = pnand %p666_p11, %p860_p1  ;;  %p672_p5 = por %p671_p4, %p670_p0 }
  0x9d   : > { %p668_p13 = pneg %p667_p12 }
  0x9f   : > { %p673_p7 = pnand %p672_p5, %p668_p13 }
  0xa1   : > { %676 = shalt.err (!%p673_p7)
}
  0xa2   : > { %s762_s20 = smov 128   ;;  %s763_s5 = smov 8  }
  0xa3   : > { %491 = dma.vmem_to_hbm [thread:$0]  (%p860_p1), %s354_s25, 384, %s356_s22, %s341_s8, %s762_s20, %s762_s20, %s763_s5  }
  0xa4 PF: > { %s370_s7 = sand.u32 1, %s727_s9   ;;  %p501_p9 = pnand %p463_p2, %p865_p3 }
  0xa5   : > { %s371_s21 = scalar_lea.sflag [#allocation4], %s370_s7 }
  0xa6   : > { %p502_p10 = pneg %p501_p9 }
  0xa8   : > { %722 = dma.done.wait (%p502_p10), %s371_s21, 384  }
  0xa9   : > { %724 = vsyncadd (%p502_p10), %s371_s21, 4294966912  ;;  %s21_s17 = sadd.s32 1, %s759_s17   ;;  %s987_s15 = sld [smem:[#allocation11_spill]] }
  0xaa   : > { %p18_p6 = scmp.ge.s32.totalorder %s21_s17, 4   ;;  %s988_s16 = sld [smem:[#allocation12_spill]] }
  0xab   : > { %s989_s9 = smov %s731_s10  ;;  %s990_s10 = smov %s735_s11 }
  0xac   : > { %s991_s11 = smov %s851_s29  ;;  %s992_s12 = smov %s743_s13 }
  0xad   : > { %s993_s13 = smov %s747_s14  ;;  %s994_s14 = smov %s854_s30 }
  0xae   :  { %20 = sbr.rel (!%p18_p6) target bundleno = 12 (0xc), region = 102 }
  0xb3   :  { %377 = vsyncpa [#allocation3], 1 }
  0xb4   :  { %379 = vsyncpa [#allocation3 + $0x1], 1 }
  0xb5   :  { %380 = vsyncpa [#allocation6], 1 }
  0xb6   :  { %382 = vsyncpa [#allocation6 + $0x1], 1 }
  0xb7   :  { %383 = vsyncpa [#allocation4], 1 }
  0xb8   :  { %385 = vsyncpa [#allocation4 + $0x1], 1 }

</bundles_post_ra>
